<compile_context>
chip_gen: v6e
topology: v6e:2x2x1
jax: 0.10.0
libtpu: 0.0.40
codegen_flags: <defaults>
</compile_context>

<pallas_src>
import functools
import math

import jax
import jax.numpy as jnp
from jax.experimental import pallas as pl
from jax.experimental.pallas import tpu as pltpu


# ----------------------------------------------------------------------------
# helpers
# ----------------------------------------------------------------------------
def _round_up(a: int, m: int) -> int:
    return ((a + m - 1) // m) * m


def _pick_tile(num_nodes: int, hidden_f: int, budget_bytes: int = 4 * 1024 * 1024) -> int:
    """Rows (node indices i) per grid step.

    Multiple of 8, at most 512, bounded so the f32 (tile, N, Hf) hidden tensor
    stays within `budget_bytes`, and never larger than the (rounded) node count.
    """
    by_vmem = budget_bytes // (4 * max(1, num_nodes) * max(1, hidden_f))
    ti = min(512, max(8, (by_vmem // 8) * 8), _round_up(num_nodes, 8))
    return max(8, (ti // 8) * 8)


# ----------------------------------------------------------------------------
# Fused GraphLayer kernel: one grid step = (batch b, tile of node rows i).
#   inputs:
#     inp_ref : (1, TI, N+F)   raw rows  [ w[b,i,:] ++ x[b,i,:] ]
#     aj_ref  : (1, N,  Hf)    x[b,:] @ W0f[:F]          (all j, batch-resident)
#     ai_ref  : (1, TI, Hf)    x[b,i] @ W0f[F:2F] + b0f  (tile of i rows)
#     wec_ref : (1, Hf)        W0f[2F,:]  (edge-weight coefficient row)
#     w1f_ref : (1, Hf)        second f layer as a row vector
#     b1f_ref : (1, 1)
#     w0g/b0g/w1g/b1g : g MLP weights (resident)
#   outputs:
#     of_ref  : (1, TI, N)     f head  (lane-dense: all j across lanes)
#     og_ref  : (1, TI, Og)    g head
# ----------------------------------------------------------------------------
def _graph_layer_kernel(inp_ref, aj_ref, ai_ref, wec_ref, w1f_ref, b1f_ref,
                        w0g_ref, b0g_ref, w1g_ref, b1g_ref,
                        of_ref, og_ref, *, num_nodes):
    N = num_nodes
    rows = inp_ref[0].astype(jnp.float32)          # (TI, N+F)
    w_tile = rows[:, :N]                           # (TI, N) adjacency weights

    aj = aj_ref[0]                                 # (N, Hf)
    ai = ai_ref[0]                                 # (TI, Hf) (bias already folded in)
    wec = wec_ref[...]                             # (1, Hf)
    w1f = w1f_ref[...]                             # (1, Hf)

    # ---- f head: factored first layer, ReLU, VPU/XLU second layer ----
    # h[i, j, :] = aj[j, :] + ai[i, :] + w[i, j] * wec[:]
    h = (aj[None, :, :]
         + ai[:, None, :]
         + w_tile[:, :, None] * wec[None, :, :])   # (TI, N, Hf)
    h = jnp.maximum(h, 0.0)
    out_f = jnp.sum(h * w1f[None, :, :], axis=-1)  # (TI, N) lane reduction (XLU)
    out_f = out_f + b1f_ref[...]                   # broadcast (1,1)

    # ---- g head: Linear -> ReLU -> Linear on the raw rows (MXU) ----
    hg = jnp.dot(rows, w0g_ref[...], preferred_element_type=jnp.float32) + b0g_ref[...]
    hg = jnp.maximum(hg, 0.0)
    out_g = jnp.dot(hg, w1g_ref[...], preferred_element_type=jnp.float32) + b1g_ref[...]

    of_ref[0] = out_f.astype(of_ref.dtype)
    og_ref[0] = out_g.astype(og_ref.dtype)


# ----------------------------------------------------------------------------
# GraphLayer forward (num_hidden_layers_f = num_hidden_layers_g = 1)
# ----------------------------------------------------------------------------
def graph_layer_forward(inp, params_f, params_g, *, num_nodes, in_features):
    B, N, D = inp.shape
    F = in_features
    assert N == num_nodes and D == N + F

    w0f, b0f, w1f, b1f = params_f        # (2F+1,Hf), (1,Hf), (Hf,1), (1,1)
    w0g, b0g, w1g, b1g = params_g        # (N+F,Hg), (1,Hg), (Hg,Og), (1,Og)
    Hf = w0f.shape[1]
    Hg = w0g.shape[1]
    Og = w1g.shape[1]

    x = inp[..., N:]                     # (B, N, F) node features

    # Factor f's first layer once (cheap (B,N,F)x(F,Hf) matmuls); the big
    # (B,N,N,2F+1) edge tensor is never built.
    hp = jax.lax.Precision.HIGHEST
    Aj = jnp.einsum('bnf,fh->bnh', x, w0f[:F, :], precision=hp)            # x[b, j] part
    Ai = jnp.einsum('bnf,fh->bnh', x, w0f[F:2 * F, :], precision=hp) + b0f  # x[b, i] part
    wec = w0f[2 * F:2 * F + 1, :]        # (1, Hf)
    w1f_row = w1f.reshape(1, Hf)

    # Tile the node (i) axis; pad ragged node counts instead of asserting.
    TI = _pick_tile(N, Hf)
    N_pad = _round_up(N, TI)
    pad = N_pad - N
    if pad:
        inp_p = jnp.pad(inp, ((0, 0), (0, pad), (0, 0)))
        Ai_p = jnp.pad(Ai, ((0, 0), (0, pad), (0, 0)))
    else:
        inp_p, Ai_p = inp, Ai

    grid = (B, N_pad // TI)
    kernel = functools.partial(_graph_layer_kernel, num_nodes=N)

    out_f, out_g = pl.pallas_call(
        kernel,
        out_shape=(
            jax.ShapeDtypeStruct((B, N_pad, N), inp.dtype),
            jax.ShapeDtypeStruct((B, N_pad, Og), inp.dtype),
        ),
        grid_spec=pltpu.PrefetchScalarGridSpec(
            num_scalar_prefetch=0,
            grid=grid,
            in_specs=[
                pl.BlockSpec((1, TI, N + F), lambda b, t: (b, t, 0)),  # raw rows
                pl.BlockSpec((1, N, Hf), lambda b, t: (b, 0, 0)),      # Aj (all j)
                pl.BlockSpec((1, TI, Hf), lambda b, t: (b, t, 0)),     # Ai tile
                pl.BlockSpec((1, Hf), lambda b, t: (0, 0)),            # edge-weight coeff
                pl.BlockSpec((1, Hf), lambda b, t: (0, 0)),            # w1f row
                pl.BlockSpec((1, 1), lambda b, t: (0, 0)),             # b1f
                pl.BlockSpec((N + F, Hg), lambda b, t: (0, 0)),        # W0g (resident)
                pl.BlockSpec((1, Hg), lambda b, t: (0, 0)),            # b0g
                pl.BlockSpec((Hg, Og), lambda b, t: (0, 0)),           # W1g (resident)
                pl.BlockSpec((1, Og), lambda b, t: (0, 0)),            # b1g
            ],
            out_specs=[
                pl.BlockSpec((1, TI, N), lambda b, t: (b, t, 0)),
                pl.BlockSpec((1, TI, Og), lambda b, t: (b, t, 0)),
            ],
        ),
        compiler_params=pltpu.CompilerParams(
            dimension_semantics=("parallel", "parallel"),
            vmem_limit_bytes=32 * 1024 * 1024),
    )(inp_p, Aj, Ai_p, wec, w1f_row, b1f, w0g, b0g, w1g, b1g)

    out_f = out_f[:, :N, :]              # drop node-axis padding
    out_g = out_g[:, :N, :]
    return jnp.concatenate([out_f, out_g], axis=-1)   # (B, N, N + Og)


# ----------------------------------------------------------------------------
# Parameter initialization (deterministic, PyTorch-Linear-style uniform init).
# Weights stored as (in_features, out_features) so kernels do x @ W + b.
# ----------------------------------------------------------------------------
def init_linear(key, fan_in, fan_out, dtype=jnp.float32):
    kw, kb = jax.random.split(key)
    bound = 1.0 / math.sqrt(fan_in)
    w = jax.random.uniform(kw, (fan_in, fan_out), dtype, -bound, bound)
    b = jax.random.uniform(kb, (1, fan_out), dtype, -bound, bound)
    return w, b


def init_mlp2(key, in_f, out_f, hidden, dtype=jnp.float32):
    k0, k1 = jax.random.split(key)
    w0, b0 = init_linear(k0, in_f, hidden, dtype)
    w1, b1 = init_linear(k1, hidden, out_f, dtype)
    return (w0, b0, w1, b1)


# ----------------------------------------------------------------------------
# Pure-JAX reference (mirrors the PyTorch forward exactly) for sanity checks.
# ----------------------------------------------------------------------------
def _mlp2_ref(x, w0, b0, w1, b1):
    hp = jax.lax.Precision.HIGHEST
    h = jnp.maximum(jnp.dot(x, w0, precision=hp) + b0, 0.0)
    return jnp.dot(h, w1, precision=hp) + b1


def graph_layer_ref(inp, params_f, params_g, *, num_nodes, in_features):
    B, N, _ = inp.shape
    F = in_features
    w = inp[..., :num_nodes]
    x = inp[..., num_nodes:]
    x_rep_i = jnp.broadcast_to(x[:, None, :, :], (B, N, N, F))   # x[b, j]
    x_rep_j = jnp.broadcast_to(x[:, :, None, :], (B, N, N, F))   # x[b, i]
    input_f = jnp.concatenate([x_rep_i, x_rep_j, w[..., None]], axis=-1)
    out_f = _mlp2_ref(input_f.reshape(-1, 2 * F + 1), *params_f).reshape(B, N, N)
    out_g = _mlp2_ref(inp.reshape(-1, N + F), *params_g).reshape(B, N, -1)
    return jnp.concatenate([out_f, out_g], axis=-1)


if __name__ == "__main__":
    def run_case(key, *, B, N, F, Og, Hf, Hg):
        k_in, k_f, k_g = jax.random.split(key, 3)
        inp = jax.random.normal(k_in, (B, N, N + F), jnp.float32)
        params_f = init_mlp2(k_f, 2 * F + 1, 1, Hf)       # edge MLP:  2F+1 -> Hf -> 1
        params_g = init_mlp2(k_g, F + N, Og, Hg)          # node MLP:  N+F  -> Hg -> Og
        fwd = jax.jit(lambda t: graph_layer_forward(
            t, params_f, params_g, num_nodes=N, in_features=F))
        out = fwd(inp)
        jax.block_until_ready(out)
        ref = graph_layer_ref(inp, params_f, params_g, num_nodes=N, in_features=F)
        assert out.shape == (B, N, N + Og)
        err = float(jnp.max(jnp.abs(out - ref)))
        assert jnp.allclose(out, ref, atol=1e-4, rtol=1e-4), f"max abs err = {err}"

    key = jax.random.PRNGKey(0)
    k1, k2 = jax.random.split(key)
    # small hyperparameters consistent with the module
    run_case(k1, B=2, N=8, F=4, Og=4, Hf=32, Hg=32)
    # ragged node count (exercises padding / no divisibility asserts)
    run_case(k2, B=3, N=10, F=4, Og=5, Hf=32, Hg=48)

    print("KERNEL_OK")
</pallas_src>

<mosaic_0001>
module attributes {stable_mosaic.version = 11 : i64} {
  func.func @_graph_layer_kernel(%arg0: i32, %arg1: i32, %arg2: memref<1x8x12xf32, #tpu.memory_space<vmem>>, %arg3: memref<1x8x32xf32, #tpu.memory_space<vmem>>, %arg4: memref<1x8x32xf32, #tpu.memory_space<vmem>>, %arg5: memref<1x32xf32, #tpu.memory_space<vmem>>, %arg6: memref<1x32xf32, #tpu.memory_space<vmem>>, %arg7: memref<1x1xf32, #tpu.memory_space<vmem>>, %arg8: memref<12x32xf32, #tpu.memory_space<vmem>>, %arg9: memref<1x32xf32, #tpu.memory_space<vmem>>, %arg10: memref<32x4xf32, #tpu.memory_space<vmem>>, %arg11: memref<1x4xf32, #tpu.memory_space<vmem>>, %arg12: memref<1x8x8xf32, #tpu.memory_space<vmem>>, %arg13: memref<1x8x4xf32, #tpu.memory_space<vmem>>) attributes {dimension_semantics = [#tpu.dimension_semantics<parallel>, #tpu.dimension_semantics<parallel>], iteration_bounds = array<i64: 2, 1>, scalar_prefetch = 0 : i64, scratch_operands = 0 : i64, tpu.core_type = #tpu.core_type<tc>, window_params = [{transform_indices = @transform_0, window_bounds = array<i64: 1, 8, 12>}, {transform_indices = @transform_1, window_bounds = array<i64: 1, 8, 32>}, {transform_indices = @transform_2, window_bounds = array<i64: 1, 8, 32>}, {pipeline_mode = #tpu.pipeline_mode<synchronous>, transform_indices = @transform_3, window_bounds = array<i64: 1, 32>}, {pipeline_mode = #tpu.pipeline_mode<synchronous>, transform_indices = @transform_4, window_bounds = array<i64: 1, 32>}, {pipeline_mode = #tpu.pipeline_mode<synchronous>, transform_indices = @transform_5, window_bounds = array<i64: 1, 1>}, {pipeline_mode = #tpu.pipeline_mode<synchronous>, transform_indices = @transform_6, window_bounds = array<i64: 12, 32>}, {pipeline_mode = #tpu.pipeline_mode<synchronous>, transform_indices = @transform_7, window_bounds = array<i64: 1, 32>}, {pipeline_mode = #tpu.pipeline_mode<synchronous>, transform_indices = @transform_8, window_bounds = array<i64: 32, 4>}, {pipeline_mode = #tpu.pipeline_mode<synchronous>, transform_indices = @transform_9, window_bounds = array<i64: 1, 4>}, {transform_indices = @transform_10, window_bounds = array<i64: 1, 8, 8>}, {transform_indices = @transform_11, window_bounds = array<i64: 1, 8, 4>}]} {
    %c0 = arith.constant 0 : index
    %c0_0 = arith.constant 0 : index
    %c0_1 = arith.constant 0 : index
    %0 = vector.load %arg2[%c0, %c0_0, %c0_1] : memref<1x8x12xf32, #tpu.memory_space<vmem>>, vector<1x8x12xf32>
    %1 = vector.shape_cast %0 : vector<1x8x12xf32> to vector<8x12xf32>
    %2 = vector.extract_strided_slice %1 {offsets = [0, 0], sizes = [8, 8], strides = [1, 1]} : vector<8x12xf32> to vector<8x8xf32>
    %c0_2 = arith.constant 0 : index
    %c0_3 = arith.constant 0 : index
    %c0_4 = arith.constant 0 : index
    %3 = vector.load %arg3[%c0_2, %c0_3, %c0_4] : memref<1x8x32xf32, #tpu.memory_space<vmem>>, vector<1x8x32xf32>
    %4 = vector.shape_cast %3 : vector<1x8x32xf32> to vector<8x32xf32>
    %c0_5 = arith.constant 0 : index
    %c0_6 = arith.constant 0 : index
    %c0_7 = arith.constant 0 : index
    %5 = vector.load %arg4[%c0_5, %c0_6, %c0_7] : memref<1x8x32xf32, #tpu.memory_space<vmem>>, vector<1x8x32xf32>
    %6 = vector.shape_cast %5 : vector<1x8x32xf32> to vector<8x32xf32>
    %c0_8 = arith.constant 0 : index
    %c0_9 = arith.constant 0 : index
    %7 = vector.load %arg5[%c0_8, %c0_9] : memref<1x32xf32, #tpu.memory_space<vmem>>, vector<1x32xf32>
    %c0_10 = arith.constant 0 : index
    %c0_11 = arith.constant 0 : index
    %8 = vector.load %arg6[%c0_10, %c0_11] : memref<1x32xf32, #tpu.memory_space<vmem>>, vector<1x32xf32>
    %9 = vector.shape_cast %4 : vector<8x32xf32> to vector<1x8x32xf32>
    %10 = vector.shape_cast %6 : vector<8x32xf32> to vector<8x1x32xf32>
    %11 = vector.broadcast %9 : vector<1x8x32xf32> to vector<8x8x32xf32>
    %12 = vector.broadcast %10 : vector<8x1x32xf32> to vector<8x8x32xf32>
    %13 = arith.addf %11, %12 : vector<8x8x32xf32>
    %14 = vector.shape_cast %2 : vector<8x8xf32> to vector<8x8x1xf32>
    %15 = vector.shape_cast %7 : vector<1x32xf32> to vector<1x1x32xf32>
    %16 = vector.broadcast %14 : vector<8x8x1xf32> to vector<8x8x32xf32>
    %17 = vector.broadcast %15 : vector<1x1x32xf32> to vector<8x8x32xf32>
    %18 = arith.mulf %16, %17 : vector<8x8x32xf32>
    %19 = arith.addf %13, %18 : vector<8x8x32xf32>
    %cst = arith.constant 0.000000e+00 : f32
    %20 = vector.broadcast %cst : f32 to vector<8x8x32xf32>
    %21 = arith.maximumf %19, %20 : vector<8x8x32xf32>
    %22 = vector.shape_cast %8 : vector<1x32xf32> to vector<1x1x32xf32>
    %23 = vector.broadcast %22 : vector<1x1x32xf32> to vector<8x8x32xf32>
    %24 = arith.mulf %21, %23 : vector<8x8x32xf32>
    %cst_12 = arith.constant dense<0.000000e+00> : vector<8x8xf32>
    %25 = vector.multi_reduction <add>, %24, %cst_12 [2] : vector<8x8x32xf32> to vector<8x8xf32>
    %c0_13 = arith.constant 0 : index
    %c0_14 = arith.constant 0 : index
    %26 = vector.load %arg7[%c0_13, %c0_14] : memref<1x1xf32, #tpu.memory_space<vmem>>, vector<1x1xf32>
    %27 = vector.broadcast %26 : vector<1x1xf32> to vector<8x8xf32>
    %28 = arith.addf %25, %27 : vector<8x8xf32>
    %c0_15 = arith.constant 0 : index
    %c0_16 = arith.constant 0 : index
    %29 = vector.load %arg8[%c0_15, %c0_16] : memref<12x32xf32, #tpu.memory_space<vmem>>, vector<12x32xf32>
    %cst_17 = arith.constant dense<0.000000e+00> : vector<8x32xf32>
    %30 = tpu.matmul %1, %29, %cst_17 {dimension_numbers = #tpu.dot_dimension_numbers<[1], [0], [0], [1], [0, 0, 1, 1], [], []>} : vector<8x12xf32>, vector<12x32xf32>, vector<8x32xf32> -> vector<8x32xf32>
    %c0_18 = arith.constant 0 : index
    %c0_19 = arith.constant 0 : index
    %31 = vector.load %arg9[%c0_18, %c0_19] : memref<1x32xf32, #tpu.memory_space<vmem>>, vector<1x32xf32>
    %32 = vector.broadcast %31 : vector<1x32xf32> to vector<8x32xf32>
    %33 = arith.addf %30, %32 : vector<8x32xf32>
    %cst_20 = arith.constant 0.000000e+00 : f32
    %34 = vector.broadcast %cst_20 : f32 to vector<8x32xf32>
    %35 = arith.maximumf %33, %34 : vector<8x32xf32>
    %c0_21 = arith.constant 0 : index
    %c0_22 = arith.constant 0 : index
    %36 = vector.load %arg10[%c0_21, %c0_22] : memref<32x4xf32, #tpu.memory_space<vmem>>, vector<32x4xf32>
    %cst_23 = arith.constant dense<0.000000e+00> : vector<8x4xf32>
    %37 = tpu.matmul %35, %36, %cst_23 {dimension_numbers = #tpu.dot_dimension_numbers<[1], [0], [0], [1], [0, 0, 1, 1], [], []>} : vector<8x32xf32>, vector<32x4xf32>, vector<8x4xf32> -> vector<8x4xf32>
    %c0_24 = arith.constant 0 : index
    %c0_25 = arith.constant 0 : index
    %38 = vector.load %arg11[%c0_24, %c0_25] : memref<1x4xf32, #tpu.memory_space<vmem>>, vector<1x4xf32>
    %39 = vector.broadcast %38 : vector<1x4xf32> to vector<8x4xf32>
    %40 = arith.addf %37, %39 : vector<8x4xf32>
    %c0_26 = arith.constant 0 : index
    %c0_27 = arith.constant 0 : index
    %c0_28 = arith.constant 0 : index
    %41 = vector.load %arg12[%c0_26, %c0_27, %c0_28] : memref<1x8x8xf32, #tpu.memory_space<vmem>>, vector<1x8x8xf32>
    %42 = vector.shape_cast %41 : vector<1x8x8xf32> to vector<8x8xf32>
    %43 = vector.shape_cast %28 : vector<8x8xf32> to vector<1x8x8xf32>
    tpu.vector_store %arg12[%c0_26, %c0_27, %c0_28], %43 {strides = array<i32>} : memref<1x8x8xf32, #tpu.memory_space<vmem>>, vector<1x8x8xf32>,
    %c0_29 = arith.constant 0 : index
    %c0_30 = arith.constant 0 : index
    %c0_31 = arith.constant 0 : index
    %44 = vector.load %arg13[%c0_29, %c0_30, %c0_31] : memref<1x8x4xf32, #tpu.memory_space<vmem>>, vector<1x8x4xf32>
    %45 = vector.shape_cast %44 : vector<1x8x4xf32> to vector<8x4xf32>
    %46 = vector.shape_cast %40 : vector<8x4xf32> to vector<1x8x4xf32>
    tpu.vector_store %arg13[%c0_29, %c0_30, %c0_31], %46 {strides = array<i32>} : memref<1x8x4xf32, #tpu.memory_space<vmem>>, vector<1x8x4xf32>,
    return
  }
  func.func @transform_0(%arg0: i32, %arg1: i32) -> (i32, i32, i32) {
    %c0_i32 = arith.constant 0 : i32
    %c0_i32_0 = arith.constant 0 : i32
    return %arg0, %arg1, %c0_i32 : i32, i32, i32
  }
  func.func @transform_1(%arg0: i32, %arg1: i32) -> (i32, i32, i32) {
    %c0_i32 = arith.constant 0 : i32
    %c0_i32_0 = arith.constant 0 : i32
    %c0_i32_1 = arith.constant 0 : i32
    return %arg0, %c0_i32, %c0_i32_0 : i32, i32, i32
  }
  func.func @transform_2(%arg0: i32, %arg1: i32) -> (i32, i32, i32) {
    %c0_i32 = arith.constant 0 : i32
    %c0_i32_0 = arith.constant 0 : i32
    return %arg0, %arg1, %c0_i32 : i32, i32, i32
  }
  func.func @transform_3(%arg0: i32, %arg1: i32) -> (i32, i32) {
    %c0_i32 = arith.constant 0 : i32
    %c0_i32_0 = arith.constant 0 : i32
    %c0_i32_1 = arith.constant 0 : i32
    return %c0_i32, %c0_i32_0 : i32, i32
  }
  func.func @transform_4(%arg0: i32, %arg1: i32) -> (i32, i32) {
    %c0_i32 = arith.constant 0 : i32
    %c0_i32_0 = arith.constant 0 : i32
    %c0_i32_1 = arith.constant 0 : i32
    return %c0_i32, %c0_i32_0 : i32, i32
  }
  func.func @transform_5(%arg0: i32, %arg1: i32) -> (i32, i32) {
    %c0_i32 = arith.constant 0 : i32
    %c0_i32_0 = arith.constant 0 : i32
    %c0_i32_1 = arith.constant 0 : i32
    return %c0_i32, %c0_i32_0 : i32, i32
  }
  func.func @transform_6(%arg0: i32, %arg1: i32) -> (i32, i32) {
    %c0_i32 = arith.constant 0 : i32
    %c0_i32_0 = arith.constant 0 : i32
    %c0_i32_1 = arith.constant 0 : i32
    return %c0_i32, %c0_i32_0 : i32, i32
  }
  func.func @transform_7(%arg0: i32, %arg1: i32) -> (i32, i32) {
    %c0_i32 = arith.constant 0 : i32
    %c0_i32_0 = arith.constant 0 : i32
    %c0_i32_1 = arith.constant 0 : i32
    return %c0_i32, %c0_i32_0 : i32, i32
  }
  func.func @transform_8(%arg0: i32, %arg1: i32) -> (i32, i32) {
    %c0_i32 = arith.constant 0 : i32
    %c0_i32_0 = arith.constant 0 : i32
    %c0_i32_1 = arith.constant 0 : i32
    return %c0_i32, %c0_i32_0 : i32, i32
  }
  func.func @transform_9(%arg0: i32, %arg1: i32) -> (i32, i32) {
    %c0_i32 = arith.constant 0 : i32
    %c0_i32_0 = arith.constant 0 : i32
    %c0_i32_1 = arith.constant 0 : i32
    return %c0_i32, %c0_i32_0 : i32, i32
  }
  func.func @transform_10(%arg0: i32, %arg1: i32) -> (i32, i32, i32) {
    %c0_i32 = arith.constant 0 : i32
    %c0_i32_0 = arith.constant 0 : i32
    return %arg0, %arg1, %c0_i32 : i32, i32, i32
  }
  func.func @transform_11(%arg0: i32, %arg1: i32) -> (i32, i32, i32) {
    %c0_i32 = arith.constant 0 : i32
    %c0_i32_0 = arith.constant 0 : i32
    return %arg0, %arg1, %c0_i32 : i32, i32, i32
  }
}

</mosaic_0001>

<bundles_post_ra>
// kernel: _lambda_.1
= control target key start
LH: loop header
LB: loop body
LE: loop exit
PB: predicated region body
PF: predicated region fallthrough
CT: control target
= control target key end

     0   :  { %s1268_s19 = smov 0   ;;  %s1270_s20 = smov 0   ;;  %s1385_s0 = inlined_call_operand.vmem [shape: f32[2,8,12], index: 0, kind: input, shape index: {}]   ;;  %s1386_s1 = inlined_call_operand.vmem [shape: f32[2,8,32], index: 1, kind: input, shape index: {}]   ;;  %s1387_s2 = inlined_call_operand.vmem [shape: f32[2,8,32], index: 2, kind: input, shape index: {}]   ;;  %s1388_s3 = inlined_call_operand.vmem [shape: f32[1,32], index: 3, kind: input, shape index: {}]   ;;  %s1389_s4 = inlined_call_operand.vmem [shape: f32[1,32], index: 4, kind: input, shape index: {}]   ;;  %s1390_s5 = inlined_call_operand.<no memory space> [shape: f32[1,1], index: 5, kind: input, shape index: {}]   ;;  %s1391_s6 = inlined_call_operand.vmem [shape: f32[12,32], index: 6, kind: input, shape index: {}]   ;;  %s1392_s7 = inlined_call_operand.vmem [shape: f32[1,32], index: 7, kind: input, shape index: {}]   ;;  %s1393_s8 = inlined_call_operand.vmem [shape: f32[32,4], index: 8, kind: input, shape index: {}]   ;;  %s1394_s9 = inlined_call_operand.vmem [shape: f32[1,4], index: 9, kind: input, shape index: {}]   ;;  %s1395_s10 = inlined_call_operand.vmem [shape: f32[2,8,8], index: 10, kind: output, shape index: {0}]   ;;  %s1396_s11 = inlined_call_operand.vmem [shape: f32[2,8,4], index: 11, kind: output, shape index: {1}]  }
   0x1   :  { %v17_v0 = vstv %s1390_s5  ;;  %s1272_s21 = smov 0  }
   0x2   :  { %18 = vst [vmem:[#allocation2] sm:$0x1] %v17_v0 }
   0x3 LB: > { %s36_s5 = sadd.s32 1, %s1195_s20  ;;  %p1104_p0 = scmp.ge.s32.totalorder %s1199_s21, 1  ;;  %s1199_s21 = sphi %s1272_s21, %s24_s21   ;;  %s1195_s20 = sphi %s1270_s20, %s1398_s20   ;;  %s1191_s19 = sphi %s1268_s19, %s1397_s19  }
   0x4   : > { %p38_p1 = scmp.ge.s32.totalorder %s36_s5, 2  ;;  %p385_p2 = scmp.lt.s32.totalorder %s1199_s21, 3 }
   0x6   : > { %s1400_s5 = smov (%p38_p1, %s36_s5), 0  ;;  %p386_p3 = pnand %p1104_p0, %p385_p2 }
   0x7   : > { %p447_p4 = scmp.lt.s32.totalorder (!%p386_p3), %s1191_s19, 1 }
   0x8   : > { %389 = sbr.rel (%p386_p3) target bundleno = 411 (0x19b), region = 60 }
   0xd   : > { %v726_v1 = vld [vmem:[%s1391_s6 + $0x8] sm:$0xf]  ;;  %vm738_vm0 = vcmask 1043456   ;;  %v489_v2 = vlaneseq  ;;  %v1201_v3 = vmov 0.0   ;;  %v725_v4 = vld [vmem:[%s1391_s6] sm:$0xff]  ;;  %vm1202_vm1 = vmmov 0  }
   0xe   : > { %1128 = vmatprep.subr.mxu0 %v1201_v3  ;;  %1132 = vmatprep.mubr.msk.f32.mxu0 %vm1202_vm1, %v1201_v3  ;;  %v816_v5 = vld [vmem:[%s1393_s8 + $0x18] sm:$0xff]  ;;  %s1402_s19 = smov (!%p447_p4, %s1191_s19), 1  ;;  %vm734_vm2 = vcmask 97280   ;;  %v815_v24 = vld [vmem:[%s1393_s8 + $0x10] sm:$0xff]  ;;  %v814_v25 = vld [vmem:[%s1393_s8 + $0x8] sm:$0xff]  ;;  %v1203_v27 = vmov 0  }
   0xf   : > { %1129 = vmatpush3.msk.msra.mxu0 %vm738_vm0, %v726_v1  ;;  %v1297_v6 = vshrl.u32 %v489_v2, 7  ;;  %1135 = vmatprep.subr.mxu1 %v1201_v3  ;;  %s1303_s28 = sshll.u32 %s1402_s19, 3  ;;  %v813_v26 = vld [vmem:[%s1393_s8] sm:$0xff]  ;;  %v1204_v28 = vmov 1966171168   ;;  %vm682_vm3 = vcmask 261120  }
  0x10   : > { %1130 = vmatprep.subr.mxu0 %v1201_v3  ;;  %1136 = vmatpush3.msra.mxu1 %v816_v5  ;;  %s453_s12 = scalar_lea.vmem %s1385_s0, %s1303_s28  ;;  %v487_v29 = vunpack.c.l.s4 %v1204_v28  ;;  %s464_s23 = scalar_lea.vmem %s1387_s2, %s1303_s28  ;;  %v1110_v50 = vld [vmem:[%s1388_s3] ss:$0 sm:$0xff]  ;;  %vm939_vm4 = vcmask 1041409   ;;  %vm941_vm5 = vcmask 1042434   ;;  %vm943_vm6 = vcmask 1043459  }
  0x11   : > { %1131 = vmatpush3.msra.mxu0 %v725_v4  ;;  %v1300_v7 = vsub.s32 0, %v1297_v6  ;;  %v598_v8 = vsub.s32 2, %v1297_v6  ;;  %1137 = vmatprep.subr.mxu1 %v1201_v3  ;;  %v591_v9 = vsub.s32 1, %v1297_v6  ;;  %v605_v10 = vsub.s32 3, %v1297_v6  ;;  %v479_v11 = vld [vmem:[%s453_s12] sm:$0xff]  ;;  %s457_s26 = scalar_lea.vmem %s1386_s1, %s1303_s28  ;;  %s471_s17 = scalar_lea.vmem %s1395_s10, %s1303_s28 }
  0x12   : > { %1143 = vmatprep.mubr.msk.f32.mxu1 %vm1202_vm1, %v1201_v3  ;;  %1133 = vmatmul.mubr.msk.f32.vlgmr.msra.gmra.mxu0 %vm734_vm2, %v479_v11  ;;  %v612_v15 = vsub.s32 4, %v1297_v6  ;;  %v619_v17 = vsub.s32 5, %v1297_v6  ;;  %v626_v19 = vsub.s32 6, %v1297_v6  ;;  %v633_v21 = vsub.s32 7, %v1297_v6  ;;  %v481_v32 = vld [vmem:[%s464_s23] sm:$0xff]  ;;  %s478_s24 = scalar_lea.vmem %s1396_s11, %s1303_s28 }
  0x13   : > { %v585_v12 = vrot.slane %v479_v11, %v1300_v7  ;;  %v599_v13 = vrot.slane %v479_v11, %v598_v8  ;;  %v592_v14 = vrot.slane %v479_v11, %v591_v9  ;;  %v606_v16 = vrot.slane %v479_v11, %v605_v10  ;;  %1138 = vmatpush3.msra.mxu1 %v815_v24  ;;  %v480_v44 = vld [vmem:[%s457_s26] sm:$0xff] }
  0x14   : > { %v613_v18 = vrot.slane %v479_v11, %v612_v15  ;;  %v620_v20 = vrot.slane %v479_v11, %v619_v17  ;;  %v627_v22 = vrot.slane %v479_v11, %v626_v19  ;;  %v634_v23 = vrot.slane %v479_v11, %v633_v21  ;;  %1139 = vmatprep.subr.mxu1 %v1201_v3  ;;  %v1111_v11 = vld [vmem:[%s1389_s4] ss:$0 sm:$0xff] }
  0x15   : > { %587 = vbcast.lane.b32.xlu0 %v585_v12, 256  ;;  %601 = vbcast.lane.b32.xlu1 %v599_v13, 256  ;;  %v488_v30 = vunpack.c.0.s8 %v487_v29  ;;  %v485_v36 = vcombine.high %v481_v32, %v481_v32  ;;  %vm945_vm7 = vcmask 1044484   ;;  %vm947_vm8 = vcmask 1045509  }
  0x16   : > { %1140 = vmatpush3.msra.mxu1 %v814_v25  ;;  %1174 = vset.pattern.permute.xlu1 %v1203_v27  ;;  %vm949_vm9 = vcmask 1046534   ;;  %vm951_vm10 = vcmask 1047559   ;;  %vm954_vm11 = vcmask 64512   ;;  %vm956_vm12 = vcmask 31744  }
  0x17   : > { %1141 = vmatprep.subr.mxu1 %v1201_v3  ;;  %1175 = vset.pattern.permute.xlu0 %v1203_v27  ;;  %v491_v31 = vsub.s32 %v488_v30, %v1297_v6 }
  0x18   : > { %1142 = vmatpush3.msra.mxu1 %v813_v26 }
  0x19   : > { %594 = vbcast.lane.b32.xlu0 %v592_v14, 256  ;;  %608 = vbcast.lane.b32.xlu1 %v606_v16, 256  ;;  %v492_v33 = vrot.slane %v481_v32, %v491_v31  ;;  %v499_v39 = vrot.slane %v485_v36, %v491_v31 }
  0x1b   : > { %v508_v34 = vrot.slane %v492_v33, %v491_v31  ;;  %v500_v35 = vcombine.high %v492_v33, %v492_v33  ;;  %v501_v43 = vcombine.high %v499_v39, %v499_v39  ;;  %v515_v45 = vrot.slane %v499_v39, %v491_v31 }
  0x1d   : > { %615 = vbcast.lane.b32.xlu0 %v613_v18, 256  ;;  %622 = vbcast.lane.b32.xlu1 %v620_v20, 256  ;;  %v530_v37 = vcombine.high %v508_v34, %v508_v34  ;;  %v522_v38 = vrot.slane %v500_v35, %v491_v31  ;;  %v537_v40 = vrot.slane %v508_v34, %v1300_v7 }
  0x1e   : > { %v529_v53 = vrot.slane %v501_v43, %v491_v31  ;;  %v553_v56 = vrot.slane %v515_v45, %v1300_v7  ;;  %v531_v57 = vcombine.high %v515_v45, %v515_v45 }
  0x1f   : > { %v545_v41 = vrot.slane %v530_v37, %v1300_v7  ;;  %v532_v42 = vcombine.high %v522_v38, %v522_v38  ;;  %v574_v46 = vadd.f32 %v537_v40, %v480_v44  ;;  %v541_v47 = vrot.slane %v522_v38, %v1300_v7 }
  0x20   : > { %v533_v58 = vcombine.high %v529_v53, %v529_v53  ;;  %v557_v1 = vrot.slane %v529_v53, %v1300_v7  ;;  %v578_v9 = vadd.f32 %v553_v56, %v480_v44  ;;  %v561_v10 = vrot.slane %v531_v57, %v1300_v7 }
  0x21   : > { %629 = vbcast.lane.b32.xlu0 %v627_v22, 256  ;;  %636 = vbcast.lane.b32.xlu1 %v634_v23, 256  ;;  %v576_v48 = vadd.f32 %v545_v41, %v480_v44  ;;  %v549_v49 = vrot.slane %v532_v42, %v1300_v7  ;;  %v575_v60 = vadd.f32 %v541_v47, %v480_v44 }
  0x22   : > { %v565_v12 = vrot.slane %v533_v58, %v1300_v7  ;;  %v579_v18 = vadd.f32 %v557_v1, %v480_v44  ;;  %v580_v24 = vadd.f32 %v561_v10, %v480_v44 }
  0x23   : > { %v577_v62 = vadd.f32 %v549_v49, %v480_v44 }
  0x24   : > { %v581_v26 = vadd.f32 %v565_v12, %v480_v44 }
  0x87   : > { %v588_v51 = vpop.permute.xlu0 %587  ;;  %v602_v52 = vpop.permute.xlu1 %601 }
  0x88   : > { %v644_v54 = vmul.f32 %v1110_v50, %v588_v51  ;;  %v646_v55 = vmul.f32 %v1110_v50, %v602_v52  ;;  %v1112_v51 = vld [vmem:[#allocation2] ss:$0 sm:$0xff] }
  0x89   : > { %v1113_v52 = vld [vmem:[%s1392_s7] ss:$0 sm:$0xff] }
  0x8a   : > { %v652_v59 = vadd.f32 %v644_v54, %v574_v46  ;;  %v654_v61 = vadd.f32 %v646_v55, %v576_v48 }
  0x8b   : > { %v595_v63 = vpop.permute.xlu0 %594  ;;  %v609_v0 = vpop.permute.xlu1 %608 }
  0x8c   : > { %v660_v3 = vmax.f32 %v652_v59, 0.0  ;;  %v645_v4 = vmul.f32 %v1110_v50, %v595_v63  ;;  %v662_v5 = vmax.f32 %v654_v61, 0.0  ;;  %v647_v8 = vmul.f32 %v1110_v50, %v609_v0 }
  0x8e   : > { %v653_v13 = vadd.f32 %v645_v4, %v575_v60  ;;  %v655_v14 = vadd.f32 %v647_v8, %v577_v62  ;;  %v674_v15 = vmul.f32 %v1111_v11, %v660_v3  ;;  %v676_v16 = vmul.f32 %v1111_v11, %v662_v5 }
  0x8f   : > { %v616_v17 = vpop.permute.xlu0 %615  ;;  %v623_v19 = vpop.permute.xlu1 %622  ;;  %v906_v62 = vand.u32 127, %v489_v2 }
  0x90   : > { %v661_v20 = vmax.f32 %v653_v13, 0.0  ;;  %v648_v21 = vmul.f32 %v1110_v50, %v616_v17  ;;  %v663_v22 = vmax.f32 %v655_v14, 0.0  ;;  %v683_v23 = vsel %vm682_vm3, %v674_v15, 0.0 }
  0x91   : > { %684 = vadd.xlane.f32.xlu0 %v683_v23  ;;  %v649_v25 = vmul.f32 %v1110_v50, %v623_v19  ;;  %v689_v7 = vsel %vm682_vm3, %v676_v16, 0.0  ;;  %v909_v1 = vsub.s32 %v906_v62, %v1297_v6 }
  0x92   : > { %v656_v27 = vadd.f32 %v648_v21, %v578_v9  ;;  %v675_v28 = vmul.f32 %v1111_v11, %v661_v20  ;;  %v677_v29 = vmul.f32 %v1111_v11, %v663_v22 }
  0x93   : > { %v630_v30 = vpop.permute.xlu0 %629  ;;  %v657_v31 = vadd.f32 %v649_v25, %v579_v18  ;;  %v637_v32 = vpop.permute.xlu1 %636 }
  0x94   : > { %v664_v33 = vmax.f32 %v656_v27, 0.0  ;;  %v650_v34 = vmul.f32 %v1110_v50, %v630_v30  ;;  %v686_v35 = vsel %vm682_vm3, %v675_v28, 0.0  ;;  %v651_v36 = vmul.f32 %v1110_v50, %v637_v32  ;;  %v1116_v28 = vld [vmem:[%s1394_s9] ss:$0 sm:$0xff] }
  0x95   : > { %687 = vadd.xlane.f32.xlu1 %v686_v35  ;;  %v665_v37 = vmax.f32 %v657_v31, 0.0  ;;  %690 = vadd.xlane.f32.xlu0 %v689_v7  ;;  %v692_v41 = vsel %vm682_vm3, %v677_v29, 0.0 }
  0x96   : > { %v658_v38 = vadd.f32 %v650_v34, %v580_v24  ;;  %v678_v39 = vmul.f32 %v1111_v11, %v664_v33  ;;  %v659_v40 = vadd.f32 %v651_v36, %v581_v26 }
  0x97   : > { %v679_v42 = vmul.f32 %v1111_v11, %v665_v37 }
  0x98   : > { %v666_v43 = vmax.f32 %v658_v38, 0.0  ;;  %v695_v44 = vsel %vm682_vm3, %v678_v39, 0.0  ;;  %v667_v45 = vmax.f32 %v659_v40, 0.0 }
  0x99   : > { %696 = vadd.xlane.f32.xlu1 %v695_v44  ;;  %693 = vadd.xlane.f32.xlu0 %v692_v41  ;;  %v698_v47 = vsel %vm682_vm3, %v679_v42, 0.0 }
  0x9a   : > { %v680_v46 = vmul.f32 %v1111_v11, %v666_v43  ;;  %v681_v48 = vmul.f32 %v1111_v11, %v667_v45 }
  0x9c   : > { %v701_v49 = vsel %vm682_vm3, %v680_v46, 0.0  ;;  %v704_v50 = vsel %vm682_vm3, %v681_v48, 0.0 }
  0x9d   : > { %702 = vadd.xlane.f32.xlu1 %v701_v49  ;;  %699 = vadd.xlane.f32.xlu0 %v698_v47 }
  0xa1   : > { %705 = vadd.xlane.f32.xlu0 %v704_v50 }
  0xae   : > { %714 = vperm.xlu1 %1174, %v1112_v51  }
  0xd2   : > { %v808_v53 = vpop.f32.mrf.mxu0 }
  0xd3   : > { %v809_v54 = vadd.f32 %v1113_v52, %v808_v53 }
  0xd4   : > { %v1134_v55 = vpop.f32.mrf.mxu0 }
  0xd5   : > { %v812_v56 = vmax.f32 %v809_v54, 0.0 }
  0xd7   : > { %1144 = vmatmul.mubr.msk.f32.vlgmr.msra.gmra.mxu1 %vm682_vm3, %v812_v56 }
 0x11a   : > { %v685_v57 = vpop.xlane.xlu0 %684 }
 0x11e   : > { %v688_v58 = vpop.xlane.xlu1 %687  ;;  %v691_v59 = vpop.xlane.xlu0 %690 }
 0x122   : > { %v697_v60 = vpop.xlane.xlu1 %696  ;;  %v694_v61 = vpop.xlane.xlu0 %693 }
 0x126   : > { %v703_v63 = vpop.xlane.xlu1 %702  ;;  %v700_v0 = vpop.xlane.xlu0 %699 }
 0x12a   : > { %v715_v3 = vpop.permute.xlu1 %714  ;;  %v706_v4 = vpop.xlane.xlu0 %705 }
 0x12b   : > { %v717_v5 = vadd.f32 %v715_v3, %v685_v57  ;;  %v718_v8 = vadd.f32 %v715_v3, %v688_v58  ;;  %v719_v9 = vadd.f32 %v715_v3, %v691_v59  ;;  %v720_v10 = vadd.f32 %v715_v3, %v694_v61 }
 0x12c   : > { %v721_v11 = vadd.f32 %v715_v3, %v697_v60  ;;  %v723_v12 = vadd.f32 %v715_v3, %v703_v63  ;;  %v722_v13 = vadd.f32 %v715_v3, %v700_v0  ;;  %v724_v14 = vadd.f32 %v715_v3, %v706_v4 }
 0x12d   : > { %v910_v15 = vrot.slane %v717_v5, %v909_v1  ;;  %v914_v16 = vrot.slane %v718_v8, %v909_v1  ;;  %v918_v17 = vrot.slane %v719_v9, %v909_v1  ;;  %v922_v2 = vrot.slane %v720_v10, %v909_v1 }
 0x12e   : > { %v926_v18 = vrot.slane %v721_v11, %v909_v1  ;;  %v930_v19 = vrot.slane %v722_v13, %v909_v1  ;;  %v934_v21 = vrot.slane %v723_v12, %v909_v1  ;;  %v938_v23 = vrot.slane %v724_v14, %v909_v1 }
 0x12f   : > { %v940_v6 = vsel %vm939_vm4, %v914_v16, %v910_v15 }
 0x130   : > { %v942_v20 = vsel %vm941_vm5, %v918_v17, %v940_v6 }
 0x131   : > { %v944_v22 = vsel %vm943_vm6, %v922_v2, %v942_v20 }
 0x132   : > { %v946_v24 = vsel %vm945_vm7, %v926_v18, %v944_v22 }
 0x133   : > { %v948_v25 = vsel %vm947_vm8, %v930_v19, %v946_v24 }
 0x134   : > { %v950_v26 = vsel %vm949_vm9, %v934_v21, %v948_v25 }
 0x135   : > { %v952_v27 = vsel %vm951_vm10, %v938_v23, %v950_v26 }
 0x136   : > { %955 = vst.msk [vmem:[%s471_s17] sm:$0xff] %vm954_vm11, %v952_v27 }
 0x197   : > { %v893_v7 = vpop.f32.mrf.mxu1 }
 0x198   : > { %v894_v29 = vadd.f32 %v1116_v28, %v893_v7 }
 0x199   : > { %v1145_v30 = vpop.f32.mrf.mxu1 }
 0x19a   : > { %957 = vst.msk [vmem:[%s478_s24] sm:$0xff] %vm956_vm12, %v894_v29 }
 0x19b PF: > { %s24_s21 = sadd.s32 1, %s1199_s21   ;;  %s1397_s19 = smov %s1195_s20 }
 0x19c   : > { %p21_p5 = scmp.ge.s32.totalorder %s24_s21, 4   ;;  %s1398_s20 = smov %s1400_s5 }
 0x19e   :  { %23 = sbr.rel (!%p21_p5) target bundleno = 3 (0x3), region = 108 }

</bundles_post_ra>
